<compile_context>
chip_gen: v6e
topology: v6e:2x2x1
jax: 0.10.0
libtpu: 0.0.40
codegen_flags: <defaults>
</compile_context>

<pallas_src>
import jax
import jax.numpy as jnp
from jax.experimental import pallas as pl
from jax.experimental.pallas import tpu as pltpu

EPS = 1e-5


def cnn_layernorm_kernel(x_ref, g_ref, b_ref, o_ref):
    # x_ref / o_ref: (G, F, TT) tile: G (batch*channel) rows, TT time columns.
    # g_ref / b_ref: (F, 1) float32 gamma / beta, resident across the grid.
    x = x_ref[...].astype(jnp.float32)
    mean = jnp.mean(x, axis=1, keepdims=True)             # (G, 1, TT)
    cent = x - mean
    var = jnp.mean(cent * cent, axis=1, keepdims=True)    # (G, 1, TT), biased
    inv = jax.lax.rsqrt(var + EPS)
    g = g_ref[...][None, :, :]                            # (1, F, 1)
    b = b_ref[...][None, :, :]                            # (1, F, 1)
    o_ref[...] = (cent * inv * g + b).astype(o_ref.dtype)


def _choose_tiles(n_rows, n_feats, n_time, itemsize, target_bytes=4 << 20):
    """Pick (rows_per_block, time_tile): big DMAs, lane-dense, >=2 grid steps."""
    row_bytes = n_feats * n_time * itemsize
    if row_bytes > target_bytes and n_time > 128:
        # Tile the time axis in 128-lane multiples (partial last block is fine
        # since the block shape stays 128-divisible).
        tt = (target_bytes // (n_feats * itemsize)) // 128 * 128
        tt = int(max(128, min(tt, n_time)))
    else:
        tt = int(n_time)
    tile_row_bytes = n_feats * tt * itemsize
    g = int(max(1, min(n_rows, target_bytes // max(tile_row_bytes, 1))))
    # Keep at least 2 grid steps so megacore chips can split the work.
    if n_rows >= 2 and pl.cdiv(n_rows, g) * pl.cdiv(n_time, tt) < 2:
        g = int(pl.cdiv(n_rows, 2))
    return g, tt


def cnn_layer_norm(x, gamma, beta):
    """x: (B, C, F, T); gamma, beta: (F,). Returns (B, C, F, T)."""
    B, C, F, T = x.shape
    N = B * C
    xr = x.reshape(N, F, T)
    g = gamma.reshape(F, 1).astype(jnp.float32)
    b = beta.reshape(F, 1).astype(jnp.float32)

    itemsize = jnp.dtype(x.dtype).itemsize
    G, TT = _choose_tiles(N, F, T, itemsize)
    block_bytes = G * F * TT * itemsize
    # in + out blocks x double-buffering + headroom; stay well under the
    # 64 MiB physical VMEM of v7x (128 MiB on v5e/v6e).
    vmem_bytes = int(min(max(6 * block_bytes, 8 << 20), 48 << 20))

    # Block dims: F is the full array extent (satisfies the sublane rule for
    # any F); TT is either full T or a multiple of 128 (satisfies lane rule).
    out = pl.pallas_call(
        cnn_layernorm_kernel,
        out_shape=jax.ShapeDtypeStruct((N, F, T), x.dtype),
        grid=(pl.cdiv(N, G), pl.cdiv(T, TT)),
        in_specs=[
            pl.BlockSpec((G, F, TT), lambda i, j: (i, 0, j)),  # x tile
            pl.BlockSpec((F, 1), lambda i, j: (0, 0)),         # gamma (resident)
            pl.BlockSpec((F, 1), lambda i, j: (0, 0)),         # beta  (resident)
        ],
        out_specs=pl.BlockSpec((G, F, TT), lambda i, j: (i, 0, j)),
        compiler_params=pltpu.CompilerParams(
            dimension_semantics=("parallel", "parallel"),
            vmem_limit_bytes=vmem_bytes,
        ),
    )(xr, g, b)
    return out.reshape(B, C, F, T)


if __name__ == "__main__":
    # Small deepspeech-like shapes: n_feats=16, time=128 (lane-dense last dim).
    B, C, F, T = 2, 4, 16, 128
    key = jax.random.PRNGKey(0)
    kx, kg, kb = jax.random.split(key, 3)
    x = jax.random.normal(kx, (B, C, F, T), dtype=jnp.float32)

    # Non-trivial affine params (PyTorch default init would be ones/zeros).
    gamma = 1.0 + 0.1 * jax.random.normal(kg, (F,), dtype=jnp.float32)
    beta = 0.1 * jax.random.normal(kb, (F,), dtype=jnp.float32)

    out = cnn_layer_norm(x, gamma, beta)
    jax.block_until_ready(out)

    # Pure-JAX reference of the PyTorch forward (LayerNorm over n_feats).
    mean = jnp.mean(x, axis=2, keepdims=True)
    var = jnp.mean((x - mean) ** 2, axis=2, keepdims=True)
    ref = (x - mean) / jnp.sqrt(var + EPS)
    ref = ref * gamma[None, None, :, None] + beta[None, None, :, None]

    assert out.shape == (B, C, F, T)
    assert jnp.allclose(out, ref, atol=1e-5, rtol=1e-5), "mismatch vs reference"
    print("KERNEL_OK")
</pallas_src>

<mosaic_0001>
module attributes {stable_mosaic.version = 11 : i64} {
  func.func @cnn_layernorm_kernel(%arg0: i32, %arg1: i32, %arg2: memref<4x16x128xf32, #tpu.memory_space<vmem>>, %arg3: memref<16x1xf32, #tpu.memory_space<vmem>>, %arg4: memref<16x1xf32, #tpu.memory_space<vmem>>, %arg5: memref<4x16x128xf32, #tpu.memory_space<vmem>>) attributes {dimension_semantics = [#tpu.dimension_semantics<parallel>, #tpu.dimension_semantics<parallel>], iteration_bounds = array<i64: 2, 1>, scalar_prefetch = 0 : i64, scratch_operands = 0 : i64, tpu.core_type = #tpu.core_type<tc>, window_params = [{transform_indices = @transform_0, window_bounds = array<i64: 4, 16, 128>}, {pipeline_mode = #tpu.pipeline_mode<synchronous>, transform_indices = @transform_1, window_bounds = array<i64: 16, 1>}, {pipeline_mode = #tpu.pipeline_mode<synchronous>, transform_indices = @transform_2, window_bounds = array<i64: 16, 1>}, {transform_indices = @transform_3, window_bounds = array<i64: 4, 16, 128>}]} {
    %c0 = arith.constant 0 : index
    %c0_0 = arith.constant 0 : index
    %c0_1 = arith.constant 0 : index
    %0 = vector.load %arg2[%c0, %c0_0, %c0_1] : memref<4x16x128xf32, #tpu.memory_space<vmem>>, vector<4x16x128xf32>
    %cst = arith.constant dense<0.000000e+00> : vector<4x128xf32>
    %1 = vector.multi_reduction <add>, %0, %cst [1] : vector<4x16x128xf32> to vector<4x128xf32>
    %2 = vector.shape_cast %1 : vector<4x128xf32> to vector<4x1x128xf32>
    %cst_2 = arith.constant 1.600000e+01 : f32
    %3 = vector.broadcast %cst_2 : f32 to vector<4x1x128xf32>
    %4 = arith.divf %2, %3 : vector<4x1x128xf32>
    %5 = vector.broadcast %4 : vector<4x1x128xf32> to vector<4x16x128xf32>
    %6 = arith.subf %0, %5 : vector<4x16x128xf32>
    %7 = arith.mulf %6, %6 : vector<4x16x128xf32>
    %cst_3 = arith.constant dense<0.000000e+00> : vector<4x128xf32>
    %8 = vector.multi_reduction <add>, %7, %cst_3 [1] : vector<4x16x128xf32> to vector<4x128xf32>
    %9 = vector.shape_cast %8 : vector<4x128xf32> to vector<4x1x128xf32>
    %cst_4 = arith.constant 1.600000e+01 : f32
    %10 = vector.broadcast %cst_4 : f32 to vector<4x1x128xf32>
    %11 = arith.divf %9, %10 : vector<4x1x128xf32>
    %cst_5 = arith.constant 9.99999974E-6 : f32
    %12 = vector.broadcast %cst_5 : f32 to vector<4x1x128xf32>
    %13 = arith.addf %11, %12 : vector<4x1x128xf32>
    %14 = math.rsqrt %13 : vector<4x1x128xf32>
    %c0_6 = arith.constant 0 : index
    %c0_7 = arith.constant 0 : index
    %15 = vector.load %arg3[%c0_6, %c0_7] : memref<16x1xf32, #tpu.memory_space<vmem>>, vector<16x1xf32>
    %16 = vector.shape_cast %15 : vector<16x1xf32> to vector<1x16x1xf32>
    %c0_8 = arith.constant 0 : index
    %c0_9 = arith.constant 0 : index
    %17 = vector.load %arg4[%c0_8, %c0_9] : memref<16x1xf32, #tpu.memory_space<vmem>>, vector<16x1xf32>
    %18 = vector.shape_cast %17 : vector<16x1xf32> to vector<1x16x1xf32>
    %19 = vector.broadcast %14 : vector<4x1x128xf32> to vector<4x16x128xf32>
    %20 = arith.mulf %6, %19 : vector<4x16x128xf32>
    %21 = vector.broadcast %16 : vector<1x16x1xf32> to vector<4x16x128xf32>
    %22 = arith.mulf %20, %21 : vector<4x16x128xf32>
    %23 = vector.broadcast %18 : vector<1x16x1xf32> to vector<4x16x128xf32>
    %24 = arith.addf %22, %23 : vector<4x16x128xf32>
    %c0_10 = arith.constant 0 : index
    %c0_11 = arith.constant 0 : index
    %c0_12 = arith.constant 0 : index
    %25 = vector.load %arg5[%c0_10, %c0_11, %c0_12] : memref<4x16x128xf32, #tpu.memory_space<vmem>>, vector<4x16x128xf32>
    tpu.vector_store %arg5[%c0_10, %c0_11, %c0_12], %24 {strides = array<i32>} : memref<4x16x128xf32, #tpu.memory_space<vmem>>, vector<4x16x128xf32>,
    return
  }
  func.func @transform_0(%arg0: i32, %arg1: i32) -> (i32, i32, i32) {
    %c0_i32 = arith.constant 0 : i32
    %c0_i32_0 = arith.constant 0 : i32
    return %arg0, %c0_i32, %arg1 : i32, i32, i32
  }
  func.func @transform_1(%arg0: i32, %arg1: i32) -> (i32, i32) {
    %c0_i32 = arith.constant 0 : i32
    %c0_i32_0 = arith.constant 0 : i32
    %c0_i32_1 = arith.constant 0 : i32
    return %c0_i32, %c0_i32_0 : i32, i32
  }
  func.func @transform_2(%arg0: i32, %arg1: i32) -> (i32, i32) {
    %c0_i32 = arith.constant 0 : i32
    %c0_i32_0 = arith.constant 0 : i32
    %c0_i32_1 = arith.constant 0 : i32
    return %c0_i32, %c0_i32_0 : i32, i32
  }
  func.func @transform_3(%arg0: i32, %arg1: i32) -> (i32, i32, i32) {
    %c0_i32 = arith.constant 0 : i32
    %c0_i32_0 = arith.constant 0 : i32
    return %arg0, %c0_i32, %arg1 : i32, i32, i32
  }
}

</mosaic_0001>

<bundles_post_ra>
// kernel: tpu_custom_call.1
= control target key start
LH: loop header
LB: loop body
LE: loop exit
PB: predicated region body
PF: predicated region fallthrough
CT: control target
= control target key end

     0   :  { %8 = vsyncpa [#allocation3], 0  ;;  %s875_s0 = inlined_call_operand.hbm [shape: f32[8,16,128], index: 0, kind: input, shape index: {}]   ;;  %s876_s1 = inlined_call_operand.vmem [shape: f32[16,1], index: 1, kind: input, shape index: {}]   ;;  %s877_s2 = inlined_call_operand.vmem [shape: f32[16,1], index: 2, kind: input, shape index: {}]   ;;  %s878_s3 = inlined_call_operand.hbm [shape: f32[8,16,128], index: 3, kind: output, shape index: {}]  }
   0x1   :  { %10 = vsyncpa [#allocation3 + $0x1], 0 }
   0x2   :  { %11 = vsyncpa [#allocation4], 0 }
   0x3   :  { %13 = vsyncpa [#allocation4 + $0x1], 0  ;;  %s698_s12 = smov 0   ;;  %s700_s13 = smov 0  }
   0x4   :  { %s702_s14 = smov 0   ;;  %s704_s15 = smov 0  }
   0x5   :  { %s706_s16 = smov 0   ;;  %s708_s17 = smov 0  }
   0x6 LB: > { %s463_s18 = sadd.s32 4294967295, %s669_s17   ;;  %s464_s19 = sadd.s32 4294967294, %s669_s17   ;;  %s669_s17 = sphi %s708_s17, %s19_s17   ;;  %s665_s16 = sphi %s706_s16, %s889_s16   ;;  %s661_s15 = sphi %s704_s15, %s888_s15   ;;  %s657_s14 = sphi %s702_s14, %s887_s14   ;;  %s653_s13 = sphi %s700_s13, %s886_s13   ;;  %s649_s12 = sphi %s698_s12, %s885_s12  }
   0x7   : > { %s31_s20 = sadd.s32 1, %s665_s16  ;;  %s40_s21 = sadd.s32 1, %s657_s14 }
   0x8   : > { %p33_p0 = scmp.ge.s32.totalorder %s31_s20, 2  ;;  %p47_p1 = scmp.ne.s32.totalorder %s657_s14, %s653_s13 }
   0x9   : > { %p48_p2 = scmp.eq.s32.totalorder %s669_s17, 0  ;;  %p53_p3 = scmp.ne.s32.totalorder %s653_s13, %s649_s12 }
   0xa   : > { %s891_s20 = smov (%p33_p0, %s31_s20), 0  ;;  %p54_p5 = scmp.eq.s32.totalorder %s463_s18, 0 }
   0xb   : > { %p739_p4 = por %p48_p2, %p47_p1  ;;  %s35_s23 = ssub.s32 %s665_s16, %s891_s20 }
   0xc   : > { %p121_p6 = scmp.eq.s32.totalorder %s463_s18, 1  ;;  %p38_p7 = scmp.eq.s32.totalorder %s35_s23, 0 }
   0xd   : > { %p745_p8 = por %p54_p5, %p53_p3  ;;  %p127_p10 = scmp.eq.s32.totalorder %s464_s19, 1 }
   0xe   : > { %p749_p9 = por %p121_p6, %p47_p1  ;;  %p496_p13 = scmp.lt.s32.totalorder %s669_s17, 2 }
   0xf   : > { %s754_s26 = scalar_select %p38_p7, %s657_s14, %s40_s21  }
  0x10   : > { %p756_p11 = por %p127_p10, %p53_p3  ;;  %s153_s28 = sand.u32 1, %s657_s14  }
  0x11   : > { %s467_s29 = sshll.u32 %s153_s28, 6  ;;  %s481_s30 = sshll.u32 %s665_s16, 10 }
  0x12   : > { %s165_s6 = scalar_lea.hbm %s875_s0, %s481_s30  ;;  %s157_s7 = scalar_lea.vmem [#allocation2], %s467_s29 }
  0x13   : > { %s166_s8 = sshll.u32 %s157_s7, 4  ;;  %p769_p0 = pnand %p496_p13, %p739_p4  ;;  %s167_s8 = int_to_ptr.vmem [resolvable:$true] %s166_s8 }
  0x14   : > { %p471_p1 = scmp.ge.s32.totalorder %s669_s17, 1  ;;  %s154_s10 = scalar_lea.sflag [#allocation3], %s153_s28 }
  0x15   : > { %p563_p2 = pneg %p769_p0  ;;  %s574_s11 = scalar_lea.vmem %s167_s8, 1024 }
  0x16   : > { %p575_p3 = scmp.ne.s32.totalorder %s167_s8, %s574_s11  ;;  %s671_s18 = smov [#allocation2]  }
  0x17   : > { %s579_s19 = sshll.u32 %s671_s18, 4  ;;  %s580_s19 = int_to_ptr.vmem [resolvable:$false] %s579_s19 }
  0x18   : > { %p577_p5 = pnand %p575_p3, %p563_p2  ;;  %s581_s21 = scalar_lea.vmem %s580_s19, 2048 }
  0x19   : > { %p582_p7 = scmp.lt.s32.totalorder %s167_s8, %s580_s19  ;;  %p583_p10 = scmp.lt.s32.totalorder %s581_s21, %s574_s11 }
  0x1a   : > { %p578_p6 = pneg %p577_p5 }
  0x1b   : > { %p584_p12 = por %p583_p10, %p582_p7 }
  0x1d   : > { %p585_p4 = pnand %p584_p12, %p578_p6 }
  0x1f   : > { %588 = shalt.err (!%p585_p4)
}
  0x20   : > { %s672_s22 = smov 128   ;;  %s673_s23 = smov 8  }
  0x21   : > { %491 = dma.hbm_to_vmem [thread:$0]  (!%p769_p0), %s165_s6, 1024, %s167_s8, %s154_s10, %s672_s22, %s672_s22, %s673_s23  }
  0x22   : > { %p174_p13 = scmp.lt.s32.totalorder %s669_s17, 3 }
  0x24   : > { %p175_p2 = pnand %p471_p1, %p174_p13 }
  0x25   : > { %s782_s28 = sand.u32 (!%p175_p2), 1, %s653_s13  }
  0x26   : > { %178 = sbr.rel (%p175_p2) target bundleno = 193 (0xc1), region = 32  ;;  %s472_s29 = sshll.u32 (!%p175_p2), %s782_s28, 6 }
  0x27   : > { %s181_s30 = scalar_lea.sflag (!%p175_p2), [#allocation3], %s782_s28  ;;  %s184_s4 = scalar_lea.vmem (!%p175_p2), [#allocation2], %s472_s29 }
  0x2b   : > { %640 = dma.done.wait (%p745_p8), %s181_s30, 1024  }
  0x2c   : > { %642 = vsyncadd (%p745_p8), %s181_s30, 4294966272  ;;  %v674_v0 = vmov 0   ;;  %v308_v1 = vld [vmem:[%s877_s2] sm:$0xff]  ;;  %v309_v3 = vld [vmem:[%s877_s2 + $0x8] sm:$0xff]  ;;  %s483_s18 = sshll.u32 %s661_s15, 10  ;;  %s206_s19 = scalar_lea.vmem [#allocation5], %s472_s29 }
  0x2d   : > { %552 = vset.pattern.permute.xlu1 %v674_v0  ;;  %551 = vset.pattern.permute.xlu0 %v674_v0  ;;  %v306_v2 = vld [vmem:[%s876_s1] sm:$0xff]  ;;  %v307_v4 = vld [vmem:[%s876_s1 + $0x8] sm:$0xff]  ;;  %v211_v7 = vld [vmem:[%s184_s4 + $0x10] sm:$0xff]  ;;  %s378_s21 = sshll.u32 %s206_s19, 4  ;;  %s825_s30 = scalar_lea.hbm %s878_s3, %s483_s18  ;;  %s827_s21 = int_to_ptr.vmem [resolvable:$true] %s378_s21 }
  0x2e   : > { %338 = vperm.xlu1 %552, %v308_v1   ;;  %320 = vperm.xlu0 %551, %v306_v2   ;;  %v209_v5 = vld [vmem:[%s184_s4] sm:$0xff]  ;;  %v210_v6 = vld [vmem:[%s184_s4 + $0x8] sm:$0xff]  ;;  %v212_v8 = vld [vmem:[%s184_s4 + $0x18] sm:$0xff]  ;;  %s363_s15 = scalar_lea.sflag [#allocation4], %s782_s28  ;;  %s589_s29 = scalar_lea.vmem %s827_s21, 1024 }
  0x2f   : > { %v213_v9 = vld [vmem:[%s184_s4 + $0x20] sm:$0xff]  ;;  %v214_v10 = vld [vmem:[%s184_s4 + $0x28] sm:$0xff]  ;;  %v215_v11 = vld [vmem:[%s184_s4 + $0x30] sm:$0xff]  ;;  %v217_v13 = vadd.f32 %v210_v6, %v209_v5  ;;  %v224_v14 = vadd.f32 %v212_v8, %v211_v7  ;;  %p590_p8 = scmp.ne.s32.totalorder %s827_s21, %s589_s29 }
  0x30   : > { %v216_v12 = vld [vmem:[%s184_s4 + $0x38] sm:$0xff]  ;;  %v231_v15 = vadd.f32 %v214_v10, %v213_v9  ;;  %s675_s4 = smov [#allocation5]  }
  0x31   : > { %v238_v16 = vadd.f32 %v216_v12, %v215_v11  ;;  %v218_v17 = vrot.slane %v217_v13, 4  ;;  %v225_v18 = vrot.slane %v224_v14, 4  ;;  %p591_p12 = pnand %p590_p8, %p749_p9  ;;  %s593_s5 = sshll.u32 %s675_s4, 4  ;;  %s594_s5 = int_to_ptr.vmem [resolvable:$false] %s593_s5 }
  0x32   : > { %343 = vperm.xlu1 %552, %v309_v3   ;;  %325 = vperm.xlu0 %551, %v307_v4   ;;  %v232_v19 = vrot.slane %v231_v15, 4  ;;  %s595_s6 = scalar_lea.vmem %s594_s5, 2048  ;;  %p596_p1 = scmp.lt.s32.totalorder %s827_s21, %s594_s5 }
  0x33   : > { %v239_v20 = vrot.slane %v238_v16, 4  ;;  %v219_v21 = vadd.f32 %v218_v17, %v217_v13  ;;  %v226_v22 = vadd.f32 %v225_v18, %v224_v14  ;;  %p592_p0 = pneg %p591_p12  ;;  %p597_p3 = scmp.lt.s32.totalorder %s595_s6, %s589_s29 }
  0x34   : > { %v233_v23 = vadd.f32 %v232_v19, %v231_v15 }
  0x35   : > { %v240_v24 = vadd.f32 %v239_v20, %v238_v16  ;;  %v220_v25 = vrot.slane %v219_v21, 2  ;;  %v227_v26 = vrot.slane %v226_v22, 2  ;;  %p598_p5 = por %p597_p3, %p596_p1 }
  0x36   : > { %v234_v27 = vrot.slane %v233_v23, 2 }
  0x37   : > { %v241_v28 = vrot.slane %v240_v24, 2  ;;  %v221_v29 = vadd.f32 %v220_v25, %v219_v21  ;;  %v228_v30 = vadd.f32 %v227_v26, %v226_v22  ;;  %p599_p6 = pnand %p598_p5, %p592_p0 }
  0x38   : > { %v235_v31 = vadd.f32 %v234_v27, %v233_v23 }
  0x39   : > { %v242_v32 = vadd.f32 %v241_v28, %v240_v24  ;;  %v222_v33 = vrot.slane %v221_v29, 1  ;;  %v229_v34 = vrot.slane %v228_v30, 1 }
  0x3a   : > { %v236_v35 = vrot.slane %v235_v31, 1 }
  0x3b   : > { %v243_v36 = vrot.slane %v242_v32, 1  ;;  %v223_v37 = vadd.f32 %v222_v33, %v221_v29  ;;  %v230_v38 = vadd.f32 %v229_v34, %v228_v30 }
  0x3c   : > { %v237_v39 = vadd.f32 %v236_v35, %v235_v31 }
  0x3d   : > { %v244_v40 = vadd.f32 %v243_v36, %v242_v32  ;;  %v246_v41 = vmul.f32 0.0625, %v223_v37  ;;  %v247_v42 = vmul.f32 0.0625, %v230_v38 }
  0x3e   : > { %v248_v43 = vmul.f32 0.0625, %v237_v39 }
  0x3f   : > { %v249_v44 = vmul.f32 0.0625, %v244_v40  ;;  %v250_v45 = vsub.f32 %v209_v5, %v246_v41  ;;  %v804_v46 = vsub.f32 %v210_v6, %v246_v41  ;;  %v252_v47 = vsub.f32 %v211_v7, %v247_v42 }
  0x40   : > { %v806_v48 = vsub.f32 %v212_v8, %v247_v42  ;;  %v254_v49 = vsub.f32 %v213_v9, %v248_v43  ;;  %v808_v50 = vsub.f32 %v214_v10, %v248_v43 }
  0x41   : > { %v256_v51 = vsub.f32 %v215_v11, %v249_v44  ;;  %v257_v52 = vsub.f32 %v216_v12, %v249_v44  ;;  %v258_v53 = vmul.f32 %v250_v45, %v250_v45  ;;  %v259_v54 = vmul.f32 %v804_v46, %v804_v46 }
  0x42   : > { %v260_v55 = vmul.f32 %v252_v47, %v252_v47  ;;  %v261_v56 = vmul.f32 %v806_v48, %v806_v48  ;;  %v262_v57 = vmul.f32 %v254_v49, %v254_v49  ;;  %v263_v58 = vmul.f32 %v808_v50, %v808_v50 }
  0x43   : > { %v264_v59 = vmul.f32 %v256_v51, %v256_v51  ;;  %v265_v60 = vmul.f32 %v257_v52, %v257_v52  ;;  %v266_v61 = vadd.f32 %v259_v54, %v258_v53 }
  0x44   : > { %v273_v62 = vadd.f32 %v261_v56, %v260_v55  ;;  %v280_v63 = vadd.f32 %v263_v58, %v262_v57 }
  0x45   : > { %v287_v0 = vadd.f32 %v265_v60, %v264_v59  ;;  %v267_v1 = vrot.slane %v266_v61, 4 }
  0x46   : > { %v274_v2 = vrot.slane %v273_v62, 4  ;;  %v281_v3 = vrot.slane %v280_v63, 4 }
  0x47   : > { %v288_v4 = vrot.slane %v287_v0, 4  ;;  %v268_v5 = vadd.f32 %v267_v1, %v266_v61 }
  0x48   : > { %v275_v6 = vadd.f32 %v274_v2, %v273_v62  ;;  %v282_v7 = vadd.f32 %v281_v3, %v280_v63 }
  0x49   : > { %v289_v8 = vadd.f32 %v288_v4, %v287_v0  ;;  %v269_v9 = vrot.slane %v268_v5, 2 }
  0x4a   : > { %v276_v10 = vrot.slane %v275_v6, 2  ;;  %v283_v11 = vrot.slane %v282_v7, 2 }
  0x4b   : > { %v290_v12 = vrot.slane %v289_v8, 2  ;;  %v270_v13 = vadd.f32 %v269_v9, %v268_v5 }
  0x4c   : > { %v277_v14 = vadd.f32 %v276_v10, %v275_v6  ;;  %v284_v15 = vadd.f32 %v283_v11, %v282_v7 }
  0x4d   : > { %v291_v16 = vadd.f32 %v290_v12, %v289_v8  ;;  %v271_v17 = vrot.slane %v270_v13, 1 }
  0x4e   : > { %v278_v18 = vrot.slane %v277_v14, 1  ;;  %v285_v19 = vrot.slane %v284_v15, 1 }
  0x4f   : > { %v292_v20 = vrot.slane %v291_v16, 1  ;;  %v272_v21 = vadd.f32 %v271_v17, %v270_v13 }
  0x50   : > { %v279_v22 = vadd.f32 %v278_v18, %v277_v14  ;;  %v286_v23 = vadd.f32 %v285_v19, %v284_v15 }
  0x51   : > { %v293_v24 = vadd.f32 %v292_v20, %v291_v16  ;;  %v294_v25 = vmul.f32 0.0625, %v272_v21 }
  0x52   : > { %v295_v26 = vmul.f32 0.0625, %v279_v22  ;;  %v296_v27 = vmul.f32 0.0625, %v286_v23 }
  0x53   : > { %v297_v28 = vmul.f32 0.0625, %v293_v24  ;;  %v298_v29 = vadd.f32 1e-05, %v294_v25 }
  0x54   : > { %v299_v30 = vadd.f32 1e-05, %v295_v26  ;;  %v300_v31 = vadd.f32 1e-05, %v296_v27 }
  0x55   : > { %v301_v32 = vadd.f32 1e-05, %v297_v28  ;;  %553 = vrsqrt.f32 %v298_v29 }
  0x56   : > { %555 = vrsqrt.f32 %v299_v30 }
  0x57   : > { %557 = vrsqrt.f32 %v300_v31 }
  0x58   : > { %559 = vrsqrt.f32 %v301_v32 }
  0x62   : > { %v554_v33 = vpop.eup %553 }
  0x63   : > { %v556_v34 = vpop.eup %555  ;;  %v310_v37 = vmul.f32 %v554_v33, %v250_v45  ;;  %v311_v43 = vmul.f32 %v554_v33, %v804_v46 }
  0x64   : > { %v558_v35 = vpop.eup %557  ;;  %v312_v38 = vmul.f32 %v556_v34, %v252_v47  ;;  %v313_v44 = vmul.f32 %v556_v34, %v806_v48 }
  0x65   : > { %v560_v36 = vpop.eup %559  ;;  %v314_v39 = vmul.f32 %v558_v35, %v254_v49  ;;  %v315_v53 = vmul.f32 %v558_v35, %v808_v50 }
  0x66   : > { %v316_v40 = vmul.f32 %v560_v36, %v256_v51  ;;  %v317_v54 = vmul.f32 %v560_v36, %v257_v52 }
  0xa9   : > { %v339_v41 = vpop.permute.xlu1 %338  ;;  %v321_v42 = vpop.permute.xlu0 %320 }
  0xaa   : > { %v328_v55 = vmul.f32 %v321_v42, %v310_v37  ;;  %v330_v56 = vmul.f32 %v321_v42, %v312_v38  ;;  %v332_v57 = vmul.f32 %v321_v42, %v314_v39  ;;  %v334_v58 = vmul.f32 %v321_v42, %v316_v40 }
  0xac   : > { %v346_v59 = vadd.f32 %v339_v41, %v328_v55  ;;  %v348_v45 = vadd.f32 %v339_v41, %v330_v56  ;;  %v350_v47 = vadd.f32 %v339_v41, %v332_v57  ;;  %v352_v49 = vadd.f32 %v339_v41, %v334_v58 }
  0xad   : > { %v326_v51 = vpop.permute.xlu0 %325  ;;  %v344_v60 = vpop.permute.xlu1 %343 }
  0xae   : > { %354 = vst [vmem:[%s206_s19] sm:$0xff] %v346_v59  ;;  %356 = vst [vmem:[%s206_s19 + $0x10] sm:$0xff] %v348_v45  ;;  %v329_v46 = vmul.f32 %v326_v51, %v311_v43  ;;  %v331_v48 = vmul.f32 %v326_v51, %v313_v44  ;;  %v333_v50 = vmul.f32 %v326_v51, %v315_v53 }
  0xaf   : > { %358 = vst [vmem:[%s206_s19 + $0x20] sm:$0xff] %v350_v47  ;;  %360 = vst [vmem:[%s206_s19 + $0x30] sm:$0xff] %v352_v49  ;;  %v335_v52 = vmul.f32 %v326_v51, %v317_v54 }
  0xb0   : > { %v347_v61 = vadd.f32 %v344_v60, %v329_v46  ;;  %v349_v62 = vadd.f32 %v344_v60, %v331_v48  ;;  %v351_v63 = vadd.f32 %v344_v60, %v333_v50 }
  0xb1   : > { %v353_v0 = vadd.f32 %v344_v60, %v335_v52 }
  0xb2   : > { %355 = vst [vmem:[%s206_s19 + $0x8] sm:$0xff] %v347_v61  ;;  %357 = vst [vmem:[%s206_s19 + $0x18] sm:$0xff] %v349_v62 }
  0xb3   : > { %359 = vst [vmem:[%s206_s19 + $0x28] sm:$0xff] %v351_v63  ;;  %361 = vst [vmem:[%s206_s19 + $0x38] sm:$0xff] %v353_v0 }
  0xb4   : > { %602 = shalt.err (!%p599_p6)
}
  0xb5   : > { %s603_s7 = scalar_lea.hbm %s825_s30, 1024  ;;  %s607_s10 = scalar_lea.hbm %s878_s3, 2048 }
  0xb6   : > { %p604_p7 = scmp.ne.s32.totalorder %s825_s30, %s603_s7  ;;  %p608_p13 = scmp.lt.s32.totalorder %s825_s30, %s878_s3 }
  0xb7   : > { %p609_p2 = scmp.lt.s32.totalorder %s607_s10, %s603_s7 }
  0xb8   : > { %p605_p10 = pnand %p604_p7, %p749_p9 }
  0xb9   : > { %p610_p8 = por %p609_p2, %p608_p13 }
  0xba   : > { %p606_p4 = pneg %p605_p10 }
  0xbc   : > { %p611_p12 = pnand %p610_p8, %p606_p4 }
  0xbe   : > { %614 = shalt.err (!%p611_p12)
}
  0xbf   : > { %s676_s18 = smov 128   ;;  %s677_s19 = smov 8  }
  0xc0   : > { %486 = dma.vmem_to_hbm [thread:$0]  (%p749_p9), %s827_s21, 1024, %s825_s30, %s363_s15, %s676_s18, %s676_s18, %s677_s19  }
  0xc1 PF: > { %s393_s22 = sand.u32 1, %s649_s12   ;;  %p884_p0 = scmp.ge.s32.totalorder %s669_s17, 2 }
  0xc2   : > { %s394_s23 = scalar_lea.sflag [#allocation4], %s393_s22 }
  0xc3   : > { %p493_p1 = pnand %p884_p0, %p756_p11 }
  0xc5   : > { %p494_p3 = pneg %p493_p1 }
  0xc7   : > { %644 = dma.done.wait (%p494_p3), %s394_s23, 1024  }
  0xc8   : > { %646 = vsyncadd (%p494_p3), %s394_s23, 4294966272  ;;  %s19_s17 = sadd.s32 1, %s669_s17   ;;  %s885_s12 = smov %s653_s13 }
  0xc9   : > { %p16_p5 = scmp.ge.s32.totalorder %s19_s17, 4   ;;  %s886_s13 = smov %s657_s14 }
  0xca   : > { %s887_s14 = smov %s754_s26  ;;  %s888_s15 = smov %s665_s16 }
  0xcb   : > { %s889_s16 = smov %s891_s20  ;;  %18 = sbr.rel (!%p16_p5) target bundleno = 6 (0x6), region = 77 }
  0xd0   :  { %399 = vsyncpa [#allocation3], 1 }
  0xd1   :  { %401 = vsyncpa [#allocation3 + $0x1], 1 }
  0xd2   :  { %402 = vsyncpa [#allocation4], 1 }
  0xd3   :  { %404 = vsyncpa [#allocation4 + $0x1], 1 }

</bundles_post_ra>
